<compile_context>
chip_gen: v5e
topology: v5e:2x2
jax: 0.10.0
libtpu: 0.0.40
codegen_flags: <defaults>
</compile_context>

<pallas_src>
import jax
import jax.numpy as jnp
from jax.experimental import pallas as pl
from jax.experimental.pallas import tpu as pltpu

LANES = 128
BR_MAX = 1024            # rows per block -> 1024*128*4B = 512 KiB / input block
_PAD_FILL = -1e30        # pos pad value: relu(pad + margin - 0) == 0 always


def _triplet_loss_kernel(margin_ref, pos_ref, neg_ref, sum_ref, zeros_ref):
    i = pl.program_id(0)

    @pl.when(i == 0)
    def _init():
        sum_ref[0, 0] = jnp.float32(0.0)
        zeros_ref[0, 0] = jnp.int32(0)

    margin = margin_ref[0]
    pos = pos_ref[...].astype(jnp.float32)
    neg = neg_ref[...].astype(jnp.float32)

    # fused elementwise hot path: relu(pos + margin - neg)
    losses = jnp.maximum(pos + margin - neg, 0.0)

    sum_ref[0, 0] += jnp.sum(losses)
    zeros_ref[0, 0] += jnp.sum((losses == 0.0).astype(jnp.int32))


def triplet_loss(positive_scores, negative_scores, margin, size_average=True):
    """Pallas equivalent of TripletLoss(margin).forward(pos, neg, size_average)."""
    pos = jnp.asarray(positive_scores).reshape(-1)
    neg = jnp.asarray(negative_scores).reshape(-1)
    if not jnp.issubdtype(pos.dtype, jnp.floating):
        pos = pos.astype(jnp.float32)
    if not jnp.issubdtype(neg.dtype, jnp.floating):
        neg = neg.astype(jnp.float32)
    n = pos.shape[0]

    # choose block rows: single block for small N, 1024-row tiles otherwise
    rows_needed = max(-(-n // LANES), 1)
    if rows_needed <= BR_MAX:
        br = rows_needed
        rows_pad = rows_needed
    else:
        br = BR_MAX
        rows_pad = -(-rows_needed // br) * br
    num_blocks = rows_pad // br
    n_total = rows_pad * LANES
    pad = n_total - n

    # pad so that padded entries produce exactly-zero losses (no in-kernel mask)
    pos2 = jnp.pad(pos, (0, pad), constant_values=_PAD_FILL).reshape(rows_pad, LANES)
    neg2 = jnp.pad(neg, (0, pad), constant_values=0.0).reshape(rows_pad, LANES)
    margin_arr = jnp.asarray([margin], jnp.float32)

    loss_sum, zeros = pl.pallas_call(
        _triplet_loss_kernel,
        out_shape=(
            jax.ShapeDtypeStruct((1, 1), jnp.float32),
            jax.ShapeDtypeStruct((1, 1), jnp.int32),
        ),
        grid=(num_blocks,),
        in_specs=[
            pl.BlockSpec(memory_space=pltpu.SMEM),            # margin scalar
            pl.BlockSpec((br, LANES), lambda i: (i, 0)),       # positive block
            pl.BlockSpec((br, LANES), lambda i: (i, 0)),       # negative block
        ],
        out_specs=(
            pl.BlockSpec(memory_space=pltpu.SMEM),
            pl.BlockSpec(memory_space=pltpu.SMEM),
        ),
        compiler_params=pltpu.CompilerParams(
            dimension_semantics=("arbitrary",)),
    )(margin_arr, pos2, neg2)

    loss_sum = loss_sum[0, 0]
    zeros = zeros[0, 0] - jnp.int32(pad)   # padded entries counted as zeros
    if size_average:
        return loss_sum / jnp.float32(n), zeros
    return loss_sum, zeros


def _reference(pos, neg, margin, size_average=True):
    losses = jnp.maximum(pos.astype(jnp.float32) + margin
                         - neg.astype(jnp.float32), 0.0)
    zeros = jnp.sum(losses == 0.0)
    return (jnp.mean(losses) if size_average else jnp.sum(losses)), zeros


if __name__ == "__main__":
    key = jax.random.PRNGKey(0)
    k1, k2, k3, k4 = jax.random.split(key, 4)
    margin = 0.5

    # --- small case: single-block (grid of 1) path, N = 200 ---
    N = 200
    positive_scores = jax.random.normal(k1, (N,), dtype=jnp.float32)
    negative_scores = jax.random.normal(k2, (N,), dtype=jnp.float32)

    loss, zeros = triplet_loss(positive_scores, negative_scores, margin,
                               size_average=True)
    loss = jax.block_until_ready(loss)
    zeros = jax.block_until_ready(zeros)
    ref_loss, ref_zeros = _reference(positive_scores, negative_scores, margin, True)
    assert jnp.allclose(loss, ref_loss, rtol=1e-6, atol=1e-6), (loss, ref_loss)
    assert int(zeros) == int(ref_zeros), (zeros, ref_zeros)

    loss_s, zeros_s = triplet_loss(positive_scores, negative_scores, margin,
                                   size_average=False)
    ref_loss_s, _ = _reference(positive_scores, negative_scores, margin, False)
    assert jnp.allclose(jax.block_until_ready(loss_s), ref_loss_s,
                        rtol=1e-6, atol=1e-5)

    # --- larger case: exercises the tiled multi-block accumulation path ---
    N2 = BR_MAX * LANES * 2 + 37   # 3 grid steps, ragged tail (still ~1 MB/array)
    pos_big = jax.random.normal(k3, (N2,), dtype=jnp.float32)
    neg_big = jax.random.normal(k4, (N2,), dtype=jnp.float32)
    loss2, zeros2 = triplet_loss(pos_big, neg_big, margin, size_average=True)
    loss2 = jax.block_until_ready(loss2)
    zeros2 = jax.block_until_ready(zeros2)
    ref_loss2, ref_zeros2 = _reference(pos_big, neg_big, margin, True)
    assert jnp.allclose(loss2, ref_loss2, rtol=1e-5, atol=1e-5), (loss2, ref_loss2)
    assert int(zeros2) == int(ref_zeros2), (zeros2, ref_zeros2)

    print("KERNEL_OK")
</pallas_src>

<mosaic_0001>
module attributes {stable_mosaic.version = 11 : i64} {
  func.func @_triplet_loss_kernel(%arg0: i32, %arg1: memref<1xf32, #tpu.memory_space<smem>>, %arg2: memref<2x128xf32, #tpu.memory_space<vmem>>, %arg3: memref<2x128xf32, #tpu.memory_space<vmem>>, %arg4: memref<1x1xf32, #tpu.memory_space<smem>>, %arg5: memref<1x1xi32, #tpu.memory_space<smem>>) attributes {dimension_semantics = [#tpu.dimension_semantics<arbitrary>], iteration_bounds = array<i64: 1>, scalar_prefetch = 0 : i64, scratch_operands = 0 : i64, tpu.core_type = #tpu.core_type<tc>, window_params = [{transform_indices = @transform_0, window_bounds = array<i64: 1>}, {transform_indices = @transform_1, window_bounds = array<i64: 2, 128>}, {transform_indices = @transform_2, window_bounds = array<i64: 2, 128>}, {transform_indices = @transform_3, window_bounds = array<i64: 1, 1>}, {transform_indices = @transform_4, window_bounds = array<i64: 1, 1>}]} {
    %c0_i32 = arith.constant 0 : i32
    %0 = arith.cmpi eq, %arg0, %c0_i32 : i32
    %1 = arith.extui %0 : i1 to i32
    %c0_i32_0 = arith.constant 0 : i32
    %2 = arith.cmpi ne, %1, %c0_i32_0 : i32
    scf.if %2 {
      %cst_16 = arith.constant 0.000000e+00 : f32
      %c0_17 = arith.constant 0 : index
      %c0_18 = arith.constant 0 : index
      %28 = memref.load %arg4[%c0_17, %c0_18] : memref<1x1xf32, #tpu.memory_space<smem>>
      memref.store %cst_16, %arg4[%c0_17, %c0_18] : memref<1x1xf32, #tpu.memory_space<smem>>
      %c0_i32_19 = arith.constant 0 : i32
      %c0_20 = arith.constant 0 : index
      %c0_21 = arith.constant 0 : index
      %29 = memref.load %arg5[%c0_20, %c0_21] : memref<1x1xi32, #tpu.memory_space<smem>>
      memref.store %c0_i32_19, %arg5[%c0_20, %c0_21] : memref<1x1xi32, #tpu.memory_space<smem>>
    } else {
    }
    %c0 = arith.constant 0 : index
    %3 = memref.load %arg1[%c0] : memref<1xf32, #tpu.memory_space<smem>>
    %c0_1 = arith.constant 0 : index
    %c0_2 = arith.constant 0 : index
    %4 = vector.load %arg2[%c0_1, %c0_2] : memref<2x128xf32, #tpu.memory_space<vmem>>, vector<2x128xf32>
    %c0_3 = arith.constant 0 : index
    %c0_4 = arith.constant 0 : index
    %5 = vector.load %arg3[%c0_3, %c0_4] : memref<2x128xf32, #tpu.memory_space<vmem>>, vector<2x128xf32>
    %6 = vector.broadcast %3 : f32 to vector<2x128xf32>
    %7 = arith.addf %4, %6 : vector<2x128xf32>
    %8 = arith.subf %7, %5 : vector<2x128xf32>
    %cst = arith.constant 0.000000e+00 : f32
    %9 = vector.broadcast %cst : f32 to vector<2x128xf32>
    %10 = arith.maximumf %8, %9 : vector<2x128xf32>
    %c0_5 = arith.constant 0 : index
    %c0_6 = arith.constant 0 : index
    %11 = memref.load %arg4[%c0_5, %c0_6] : memref<1x1xf32, #tpu.memory_space<smem>>
    %12 = vector.shape_cast %10 : vector<2x128xf32> to vector<1x2x128xf32>
    %cst_7 = arith.constant dense<0.000000e+00> : vector<1xf32>
    %13 = vector.multi_reduction <add>, %12, %cst_7 [1, 2] : vector<1x2x128xf32> to vector<1xf32>
    %14 = vector.shape_cast %13 : vector<1xf32> to vector<1x1x1xf32>
    %15 = vector.extract %14[0, 0, 0] : f32 from vector<1x1x1xf32>
    %16 = arith.addf %11, %15 : f32
    %c0_8 = arith.constant 0 : index
    %c0_9 = arith.constant 0 : index
    %17 = memref.load %arg4[%c0_8, %c0_9] : memref<1x1xf32, #tpu.memory_space<smem>>
    memref.store %16, %arg4[%c0_8, %c0_9] : memref<1x1xf32, #tpu.memory_space<smem>>
    %c0_10 = arith.constant 0 : index
    %c0_11 = arith.constant 0 : index
    %18 = memref.load %arg5[%c0_10, %c0_11] : memref<1x1xi32, #tpu.memory_space<smem>>
    %cst_12 = arith.constant 0.000000e+00 : f32
    %19 = vector.broadcast %cst_12 : f32 to vector<2x128xf32>
    %20 = arith.cmpf oeq, %10, %19 : vector<2x128xf32>
    %21 = arith.extui %20 : vector<2x128xi1> to vector<2x128xi32>
    %22 = vector.shape_cast %21 : vector<2x128xi32> to vector<1x2x128xi32>
    %cst_13 = arith.constant dense<0> : vector<1xi32>
    %23 = vector.multi_reduction <add>, %22, %cst_13 [1, 2] : vector<1x2x128xi32> to vector<1xi32>
    %24 = vector.shape_cast %23 : vector<1xi32> to vector<1x1x1xi32>
    %25 = vector.extract %24[0, 0, 0] : i32 from vector<1x1x1xi32>
    %26 = arith.addi %18, %25 : i32
    %c0_14 = arith.constant 0 : index
    %c0_15 = arith.constant 0 : index
    %27 = memref.load %arg5[%c0_14, %c0_15] : memref<1x1xi32, #tpu.memory_space<smem>>
    memref.store %26, %arg5[%c0_14, %c0_15] : memref<1x1xi32, #tpu.memory_space<smem>>
    return
  }
  func.func @transform_0(%arg0: i32) -> i32 {
    %c0_i32 = arith.constant 0 : i32
    %c0_i32_0 = arith.constant 0 : i32
    return %c0_i32 : i32
  }
  func.func @transform_1(%arg0: i32) -> (i32, i32) {
    %c0_i32 = arith.constant 0 : i32
    %c0_i32_0 = arith.constant 0 : i32
    return %arg0, %c0_i32 : i32, i32
  }
  func.func @transform_2(%arg0: i32) -> (i32, i32) {
    %c0_i32 = arith.constant 0 : i32
    %c0_i32_0 = arith.constant 0 : i32
    return %arg0, %c0_i32 : i32, i32
  }
  func.func @transform_3(%arg0: i32) -> (i32, i32) {
    %c0_i32 = arith.constant 0 : i32
    %c0_i32_0 = arith.constant 0 : i32
    %c0_i32_1 = arith.constant 0 : i32
    return %c0_i32, %c0_i32_0 : i32, i32
  }
  func.func @transform_4(%arg0: i32) -> (i32, i32) {
    %c0_i32 = arith.constant 0 : i32
    %c0_i32_0 = arith.constant 0 : i32
    %c0_i32_1 = arith.constant 0 : i32
    return %c0_i32, %c0_i32_0 : i32, i32
  }
}

</mosaic_0001>

<bundles_post_ra>
// kernel: tpu_custom_call.1
= control target key start
LH: loop header
LB: loop body
LE: loop exit
PB: predicated region body
PF: predicated region fallthrough
CT: control target
= control target key end

     0   :  { %11 = vsyncpa [#allocation4], 0  ;;  %s227_s0 = inlined_call_operand.<no memory space> [shape: f32[1], index: 0, kind: input, shape index: {}]   ;;  %s228_s1 = inlined_call_operand.vmem [shape: f32[2,128], index: 1, kind: input, shape index: {}]   ;;  %s229_s2 = inlined_call_operand.hbm [shape: f32[2,128], index: 2, kind: input, shape index: {}]   ;;  %s230_s3 = inlined_call_operand.hbm [shape: f32[1,1], index: 3, kind: output, shape index: {0}]   ;;  %s231_s4 = inlined_call_operand.hbm [shape: s32[1,1], index: 4, kind: output, shape index: {1}]  }
   0x1   :  { %12 = vsyncpa [#allocation5], 0 }
   0x2   :  { %13 = vsyncpa [#allocation8], 0  ;;  %s23_s17 = sshll.u32 %s229_s2, 4  ;;  %s183_s18 = smov [#allocation3]   ;;  %s24_s17 = int_to_ptr.hbm [resolvable:$true] %s23_s17 }
   0x3   :  { %s25_s19 = sshll.u32 %s183_s18, 4  ;;  %s26_s19 = int_to_ptr.vmem [resolvable:$true] %s25_s19 }
   0x4   :  { %28 = dma.hbm_to_vmem [thread:$0]  %s24_s17, 32, %s26_s19, [#allocation4]  }
   0x5   :  { %177 = dma.done.wait [#allocation4], 32  }
   0x6   :  { %178 = vsyncadd [#allocation4], 4294967264  ;;  %v44_v0 = vstv %s227_s0  ;;  %v42_v1 = vld [vmem:[%s228_s1] sm:$0x3]  ;;  %vm49_vm0 = vcmask 1041408   ;;  %v184_v7 = vmov 0  }
   0x7   :  { %v43_v2 = vld [vmem:[#allocation3] sm:$0x3]  ;;  %v45_v3 = vadd.f32 %v44_v0, %v42_v1  ;;  %s94_s2 = sshll.u32 %s230_s3, 4  ;;  %s185_s25 = smov [#allocation6]   ;;  %s95_s2 = int_to_ptr.hbm [resolvable:$true] %s94_s2 }
   0x8   :  { %s103_s28 = sshll.u32 %s231_s4, 4  ;;  %s186_s30 = smov [#allocation7]   ;;  %s104_s28 = int_to_ptr.hbm [resolvable:$true] %s103_s28 }
   0x9   :  { %v46_v4 = vsub.f32 %v45_v3, %v43_v2 }
   0xb   :  { %v47_v5 = vmax.f32 %v46_v4, 0.0 }
   0xd   :  { %vm64_vm1 = vcmp.eq.f32.partialorder %v47_v5, 0.0  ;;  %v50_v6 = vsel %vm49_vm0, %v47_v5, 0.0 }
   0xe   :  { %v65_v8 = vsel %vm64_vm1, 1, %v184_v7  ;;  %51 = vadd.xlane.f32.xlu1 %v50_v6 }
   0xf   :  { %v66_v9 = vsel %vm49_vm0, %v65_v8, 0 }
  0x10   :  { %v68_v10 = vshrl.u32 %v66_v9, 16  ;;  %v67_v12 = vand.u32 65535, %v66_v9 }
  0x12   :  { %v70_v11 = vcvt.s32.f32 %v68_v10  ;;  %v69_v13 = vcvt.s32.f32 %v67_v12 }
  0x14   :  { %73 = vadd.xlane.f32.xlu0 %v70_v11 }
  0x1c   :  { %71 = vadd.xlane.f32.xlu0 %v69_v13 }
  0x81   :  { %v52_v14 = vpop.xlane.xlu1 %51 }
  0x82   :  { %v53_v15 = vrot.slane %v52_v14, 4 }
  0x84   :  { %v54_v16 = vadd.f32 %v53_v15, %v52_v14 }
  0x86   :  { %v55_v17 = vrot.slane %v54_v16, 2 }
  0x87   :  { %v74_v18 = vpop.xlane.xlu0 %73 }
  0x88   :  { %v56_v19 = vadd.f32 %v55_v17, %v54_v16  ;;  %v76_v21 = vcvt.f32.s32 %v74_v18 }
  0x8a   :  { %v57_v20 = vrot.slane %v56_v19, 1  ;;  %v77_v24 = vshll.u32 %v76_v21, 16 }
  0x8c   :  { %v58_v22 = vadd.f32 %v57_v20, %v56_v19 }
  0x8e   :  { %119 = vpush %v58_v22 }
  0x8f   :  { %v72_v23 = vpop.xlane.xlu0 %71 }
  0x90   :  { %v75_v25 = vcvt.f32.s32 %v72_v23 }
  0x92   :  { %v78_v26 = vadd.s32 %v77_v24, %v75_v25 }
  0x94   :  { %v79_v27 = vrot.slane %v78_v26, 4 }
  0x96   :  { %v80_v28 = vadd.s32 %v79_v27, %v78_v26 }
  0x98   :  { %v81_v29 = vrot.slane %v80_v28, 2 }
  0x9a   :  { %v82_v30 = vadd.s32 %v81_v29, %v80_v28 }
  0x9c   :  { %v83_v31 = vrot.slane %v82_v30, 1 }
  0x9e   :  { %v84_v32 = vadd.s32 %v83_v31, %v82_v30 }
  0xa0   :  { %121 = vpush %v84_v32 }
  0xbf   :  { %s120_s24 = spop %119 }
  0xc0   :  { %62 = sst [smem:[#allocation6]] %s120_s24 }
  0xc1   :  { %97 = dma.smem_to_hbm %s185_s25, 16, %s95_s2, [#allocation5]  }
  0xd1   :  { %s122_s29 = spop %121 }
  0xd2   :  { %88 = sst [smem:[#allocation7]] %s122_s29 }
  0xd3   :  { %106 = dma.smem_to_hbm %s186_s30, 16, %s104_s28, [#allocation8]  }
  0xd4   :  { %179 = dma.done.wait [#allocation5], 16  }
  0xd5   :  { %180 = vsyncadd [#allocation5], 4294967280 }
  0xd6   :  { %181 = dma.done.wait [#allocation8], 16  }
  0xd7   :  { %182 = vsyncadd [#allocation8], 4294967280 }
  0xd8   :  { %115 = sfence }
  0xd9   :  { %116 = vsyncpa [#allocation4], 1 }
  0xda   :  { %117 = vsyncpa [#allocation5], 1 }
  0xdb   :  { %118 = vsyncpa [#allocation8], 1 }

</bundles_post_ra>
